<compile_context>
chip_gen: v5e
topology: v5e:2x2
jax: 0.10.0
libtpu: 0.0.40
codegen_flags: <defaults>
</compile_context>

<pallas_src>
import math
import functools

import jax
import jax.numpy as jnp
from jax.experimental import pallas as pl
from jax.experimental.pallas import tpu as pltpu

BN_EPS = 1e-5
PW_TILE_M = 1024                  # rows per pointwise-matmul grid step


def _default_vmem_limit():
    # generation-aware scoped-VMEM budget: ~half of physical, capped at 64 MiB
    # (v5e/v6e: 128 MiB -> 64 MiB; v7x: 64 MiB -> 32 MiB).
    try:
        cap = int(pltpu.get_tpu_info().vmem_capacity_bytes)
        return int(max(32 * 1024 * 1024, min(cap // 2, 64 * 1024 * 1024)))
    except Exception:
        return 32 * 1024 * 1024


VMEM_LIMIT = _default_vmem_limit()


def _make_divisible(v, divisor, min_value=None):
    if min_value is None:
        min_value = divisor
    new_v = max(min_value, int(v + divisor / 2) // divisor * divisor)
    if new_v < 0.9 * v:
        new_v += divisor
    return new_v


def _relu6(x):
    return jnp.minimum(jnp.maximum(x, 0.0), 6.0)


# ---------------------------------------------------------------------------
# Pointwise (1x1 conv) kernels -- MXU matmuls, BN scale folded into weights
# ---------------------------------------------------------------------------

def _pw_kernel(x_ref, w_ref, b_ref, *rest, relu6, has_res):
    """(TM, Cin) @ (Cin, Cout) + bias (+ReLU6) (+residual, applied after the act)."""
    if has_res:
        r_ref, o_ref = rest
    else:
        (o_ref,) = rest
    y = jnp.dot(x_ref[...], w_ref[...], preferred_element_type=jnp.float32)
    y = y + b_ref[...]
    if relu6:
        y = _relu6(y)
    if has_res:
        y = y + r_ref[...].astype(jnp.float32)
    o_ref[...] = y.astype(o_ref.dtype)


def pointwise_conv_bn(x2d, w, bias, relu6, residual=None):
    M, Cin = x2d.shape
    Cout = w.shape[1]
    tm = M if M <= PW_TILE_M else PW_TILE_M
    grid = (pl.cdiv(M, tm),)
    has_res = residual is not None

    in_specs = [
        pl.BlockSpec((tm, Cin), lambda i: (i, 0)),
        pl.BlockSpec((Cin, Cout), lambda i: (0, 0)),   # weights stay VMEM-resident
        pl.BlockSpec((1, Cout), lambda i: (0, 0)),
    ]
    args = [x2d, w, bias.reshape(1, Cout)]
    if has_res:
        in_specs.append(pl.BlockSpec((tm, Cout), lambda i: (i, 0)))
        args.append(residual)

    bytes_accessed = 2 * (M * Cin + Cin * Cout + M * Cout + (M * Cout if has_res else 0)) + 4 * Cout
    return pl.pallas_call(
        functools.partial(_pw_kernel, relu6=relu6, has_res=has_res),
        out_shape=jax.ShapeDtypeStruct((M, Cout), jnp.bfloat16),
        grid=grid,
        in_specs=in_specs,
        out_specs=pl.BlockSpec((tm, Cout), lambda i: (i, 0)),
        compiler_params=pltpu.CompilerParams(
            dimension_semantics=("parallel",),
            vmem_limit_bytes=VMEM_LIMIT),
        cost_estimate=pl.CostEstimate(flops=2 * M * Cin * Cout,
                                      transcendentals=0,
                                      bytes_accessed=int(bytes_accessed)),
    )(*args)


def _pw_expand_project_kernel(x_ref, w1_ref, b1_ref, w2_ref, b2_ref, o_ref, h_ref):
    """Fused expand (1x1 + ReLU6) -> project (1x1): hidden activation stays in VMEM."""
    h = jnp.dot(x_ref[...], w1_ref[...], preferred_element_type=jnp.float32)
    h = _relu6(h + b1_ref[...])
    h_ref[...] = h.astype(h_ref.dtype)              # (TM, hidden_pad) bf16, VMEM only
    y = jnp.dot(h_ref[...], w2_ref[...], preferred_element_type=jnp.float32)
    y = y + b2_ref[...]
    o_ref[...] = y.astype(o_ref.dtype)


def fused_pw_expand_project(x2d, w1, b1, w2, b2):
    M, Cin = x2d.shape
    Hpad = w1.shape[1]                               # hidden padded to a multiple of 128
    Cout = w2.shape[1]
    tm = M if M <= PW_TILE_M else PW_TILE_M
    grid = (pl.cdiv(M, tm),)
    bytes_accessed = 2 * (M * Cin + M * Cout + Cin * Hpad + Hpad * Cout) + 4 * (Hpad + Cout)
    return pl.pallas_call(
        _pw_expand_project_kernel,
        out_shape=jax.ShapeDtypeStruct((M, Cout), jnp.bfloat16),
        grid=grid,
        in_specs=[
            pl.BlockSpec((tm, Cin), lambda i: (i, 0)),
            pl.BlockSpec((Cin, Hpad), lambda i: (0, 0)),
            pl.BlockSpec((1, Hpad), lambda i: (0, 0)),
            pl.BlockSpec((Hpad, Cout), lambda i: (0, 0)),
            pl.BlockSpec((1, Cout), lambda i: (0, 0)),
        ],
        out_specs=pl.BlockSpec((tm, Cout), lambda i: (i, 0)),
        scratch_shapes=[pltpu.VMEM((tm, Hpad), jnp.bfloat16)],
        compiler_params=pltpu.CompilerParams(
            dimension_semantics=("parallel",),
            vmem_limit_bytes=VMEM_LIMIT),
        cost_estimate=pl.CostEstimate(flops=2 * M * Hpad * (Cin + Cout),
                                      transcendentals=0,
                                      bytes_accessed=int(bytes_accessed)),
    )(x2d, w1, b1.reshape(1, Hpad), w2, b2.reshape(1, Cout))


# ---------------------------------------------------------------------------
# Depthwise 3x3 kernels -- pad-once VMEM scratch, 9 static tap slices (no concat)
# ---------------------------------------------------------------------------

def _dw_taps(xp_ref, w_ref, H, W):
    """3x3 depthwise accumulate reading from a zero-padded (1,H+2,W+2,C) VMEM ref (f32)."""
    acc = None
    for dy in range(3):
        for dx in range(3):
            tap = xp_ref[:, dy:dy + H, dx:dx + W, :].astype(jnp.float32)
            t = tap * w_ref[dy * 3 + dx: dy * 3 + dx + 1, :]       # (1,H,W,C) * (1,C)
            acc = t if acc is None else acc + t
    return acc


def _dw_kernel(x_ref, w_ref, b_ref, *rest, relu6, has_res):
    """Depthwise 3x3, stride 1, pad 1 on one image; BN scale folded into the weights."""
    if has_res:
        r_ref, o_ref, xp_ref = rest
    else:
        o_ref, xp_ref = rest
    H, W = x_ref.shape[1], x_ref.shape[2]
    # zero the padded scratch (one cheap store pass), then write the interior once
    xp_ref[...] = jnp.zeros_like(xp_ref)
    xp_ref[:, 1:H + 1, 1:W + 1, :] = x_ref[...]
    y = _dw_taps(xp_ref, w_ref, H, W) + b_ref[...]
    if relu6:
        y = _relu6(y)
    if has_res:
        y = y + r_ref[...].astype(jnp.float32)       # residual after the full conv stack
    o_ref[...] = y.astype(o_ref.dtype)


def depthwise_conv_bn(x, w9c, bias, relu6, residual=None):
    # TODO(synk): for v7x with tiny batches an H-tiling grid axis (1-row halo) would
    #             feed both TensorCores; per-image blocks are small enough here.
    N, H, W, C = x.shape
    has_res = residual is not None
    in_specs = [
        pl.BlockSpec((1, H, W, C), lambda n: (n, 0, 0, 0)),
        pl.BlockSpec((9, C), lambda n: (0, 0)),
        pl.BlockSpec((1, C), lambda n: (0, 0)),
    ]
    args = [x, w9c, bias.reshape(1, C)]
    if has_res:
        in_specs.append(pl.BlockSpec((1, H, W, C), lambda n: (n, 0, 0, 0)))
        args.append(residual)
    bytes_accessed = 2 * N * H * W * C * (3 if has_res else 2) + 4 * 10 * C
    return pl.pallas_call(
        functools.partial(_dw_kernel, relu6=relu6, has_res=has_res),
        out_shape=jax.ShapeDtypeStruct((N, H, W, C), jnp.bfloat16),
        grid=(N,),
        in_specs=in_specs,
        out_specs=pl.BlockSpec((1, H, W, C), lambda n: (n, 0, 0, 0)),
        scratch_shapes=[pltpu.VMEM((1, H + 2, W + 2, C), jnp.bfloat16)],
        compiler_params=pltpu.CompilerParams(
            dimension_semantics=("parallel",),
            vmem_limit_bytes=VMEM_LIMIT),
        cost_estimate=pl.CostEstimate(flops=2 * 9 * N * H * W * C,
                                      transcendentals=0,
                                      bytes_accessed=int(bytes_accessed)),
    )(*args)


def _dw_dw_kernel(x_ref, w1_ref, b1_ref, w2_ref, b2_ref, o_ref, xp_ref):
    """Fused dw3x3+BN (no act) -> dw3x3+BN+ReLU6 (t==1 block); intermediate stays in VMEM."""
    H, W = x_ref.shape[1], x_ref.shape[2]
    xp_ref[...] = jnp.zeros_like(xp_ref)
    xp_ref[:, 1:H + 1, 1:W + 1, :] = x_ref[...]
    y1 = _dw_taps(xp_ref, w1_ref, H, W) + b1_ref[...]            # no activation
    xp_ref[:, 1:H + 1, 1:W + 1, :] = y1.astype(xp_ref.dtype)     # borders stay zero
    y2 = _dw_taps(xp_ref, w2_ref, H, W) + b2_ref[...]
    o_ref[...] = _relu6(y2).astype(o_ref.dtype)


def fused_double_depthwise(x, w1, b1, w2, b2):
    N, H, W, C = x.shape
    return pl.pallas_call(
        _dw_dw_kernel,
        out_shape=jax.ShapeDtypeStruct((N, H, W, C), jnp.bfloat16),
        grid=(N,),
        in_specs=[
            pl.BlockSpec((1, H, W, C), lambda n: (n, 0, 0, 0)),
            pl.BlockSpec((9, C), lambda n: (0, 0)),
            pl.BlockSpec((1, C), lambda n: (0, 0)),
            pl.BlockSpec((9, C), lambda n: (0, 0)),
            pl.BlockSpec((1, C), lambda n: (0, 0)),
        ],
        out_specs=pl.BlockSpec((1, H, W, C), lambda n: (n, 0, 0, 0)),
        scratch_shapes=[pltpu.VMEM((1, H + 2, W + 2, C), jnp.bfloat16)],
        compiler_params=pltpu.CompilerParams(
            dimension_semantics=("parallel",),
            vmem_limit_bytes=VMEM_LIMIT),
        cost_estimate=pl.CostEstimate(flops=2 * 2 * 9 * N * H * W * C,
                                      transcendentals=0,
                                      bytes_accessed=int(2 * 2 * N * H * W * C + 4 * 20 * C)),
    )(x, w1, b1.reshape(1, C), w2, b2.reshape(1, C))


# ---------------------------------------------------------------------------
# Fused, batched head: 1x1 conv + BN + ReLU6 + global avg-pool + Linear (f32 logits)
# ---------------------------------------------------------------------------

def _head_kernel(x_ref, hw_ref, hb_ref, cw_ref, cb_ref, o_ref, *, batch, pixels):
    x = x_ref[...]                                               # (N*HW, Cin) bf16
    h = jnp.dot(x, hw_ref[...], preferred_element_type=jnp.float32) + hb_ref[...]
    h = _relu6(h)                                                # (N*HW, Chead) f32
    if pixels == 1:
        feat = h
    else:
        feat = jnp.mean(h.reshape(batch, pixels, -1), axis=1)    # (N, Chead) f32
    logits = jnp.dot(feat, cw_ref[...],
                     preferred_element_type=jnp.float32) + cb_ref[...]   # f32 classifier
    o_ref[...] = logits


def fused_head(x2d, batch, pixels, head_w, head_b, cls_w, cls_b):
    M, Cin = x2d.shape
    Chead = head_w.shape[1]
    ncls = cls_w.shape[1]
    return pl.pallas_call(
        functools.partial(_head_kernel, batch=batch, pixels=pixels),
        out_shape=jax.ShapeDtypeStruct((batch, ncls), jnp.float32),
        grid=(1,),
        in_specs=[
            pl.BlockSpec((M, Cin), lambda i: (0, 0)),
            pl.BlockSpec((Cin, Chead), lambda i: (0, 0)),
            pl.BlockSpec((1, Chead), lambda i: (0, 0)),
            pl.BlockSpec((Chead, ncls), lambda i: (0, 0)),
            pl.BlockSpec((1, ncls), lambda i: (0, 0)),
        ],
        out_specs=pl.BlockSpec((batch, ncls), lambda i: (0, 0)),
        compiler_params=pltpu.CompilerParams(
            dimension_semantics=("arbitrary",),
            vmem_limit_bytes=VMEM_LIMIT),
        cost_estimate=pl.CostEstimate(
            flops=2 * (M * Cin * Chead + batch * Chead * ncls),
            transcendentals=0,
            bytes_accessed=int(2 * (M * Cin + Cin * Chead) + 4 * (Chead * ncls + batch * ncls))),
    )(x2d, head_w, head_b.reshape(1, Chead), cls_w, cls_b.reshape(1, ncls))


def conv3x3_s2_bn_relu6(x, w2d, bias):
    # stem: 3x3 conv, stride 2, pad 1 -> bf16 im2col (XLA glue) + Pallas MXU matmul.
    # TODO(synk): the 9*Cin patch tensor still round-trips HBM; Cin=3 so it is tiny.
    N, H, W, Cin = x.shape
    Cout = w2d.shape[1]
    Ho = (H + 2 - 3) // 2 + 1
    Wo = (W + 2 - 3) // 2 + 1
    xp = jnp.pad(x, ((0, 0), (1, 1), (1, 1), (0, 0)))
    cols = [xp[:, dy:dy + 2 * Ho:2, dx:dx + 2 * Wo:2, :]
            for dy in range(3) for dx in range(3)]
    patches = jnp.concatenate(cols, axis=-1).reshape(N * Ho * Wo, 9 * Cin)
    y = pointwise_conv_bn(patches, w2d, bias, relu6=True)
    return y.reshape(N, Ho, Wo, Cout)


# ---------------------------------------------------------------------------
# Parameter initialization (mirrors MobileNetV2._initialize_weights, BN folded)
# ---------------------------------------------------------------------------

def init_mobilenetv2(key, num_classes=1000, width_mult=1.0):
    cfgs = [[1, 16, 1, 1], [6, 24, 2, 2], [6, 32, 3, 2], [6, 64, 4, 2],
            [6, 96, 3, 1], [6, 160, 3, 2], [6, 320, 1, 1]]
    keys = iter(jax.random.split(key, 256))
    bn_scale = 1.0 / math.sqrt(1.0 + BN_EPS)     # gamma=1, beta=0, mean=0, var=1 folded

    def conv_w(shape, fan_n):
        std = math.sqrt(2.0 / fan_n)
        return std * jax.random.normal(next(keys), shape, dtype=jnp.float32)

    def pw(cin, cout):
        w = conv_w((cin, cout), cout) * bn_scale
        return w.astype(jnp.bfloat16), jnp.zeros((cout,), jnp.float32)

    def pw_pair(cin, hidden, cout):
        # fused expand+project weights; hidden zero-padded to a multiple of 128
        hpad = ((hidden + 127) // 128) * 128
        w1 = conv_w((cin, hidden), hidden) * bn_scale
        w2 = conv_w((hidden, cout), cout) * bn_scale
        w1p = jnp.zeros((cin, hpad), jnp.float32).at[:, :hidden].set(w1)
        w2p = jnp.zeros((hpad, cout), jnp.float32).at[:hidden, :].set(w2)
        return (w1p.astype(jnp.bfloat16), jnp.zeros((hpad,), jnp.float32),
                w2p.astype(jnp.bfloat16), jnp.zeros((cout,), jnp.float32))

    def dw(c):
        w = conv_w((3, 3, c), 9 * c) * bn_scale
        return w.reshape(9, c), jnp.zeros((c,), jnp.float32)

    params = {}
    input_channel = _make_divisible(32 * width_mult, 4 if width_mult == 0.1 else 8)
    stem = conv_w((3, 3, 3, input_channel), 9 * input_channel) * bn_scale
    params['stem_w'] = stem.reshape(27, input_channel).astype(jnp.bfloat16)
    params['stem_b'] = jnp.zeros((input_channel,), jnp.float32)

    blocks = []
    for t, c, n, s in cfgs:
        output_channel = _make_divisible(c * width_mult, 4 if width_mult == 0.1 else 8)
        for i in range(n):
            stride = s if i == 0 else 1
            inp, oup = input_channel, output_channel
            hidden = round(inp * t)
            blk = {'t': t, 'stride': stride,
                   'identity': (stride == 1 and inp == oup)}
            if t == 1:
                assert stride == 1          # holds for this config (only [1,16,1,1])
                blk['dw1_w'], blk['dw1_b'] = dw(hidden)
                blk['dw2_w'], blk['dw2_b'] = dw(hidden)
                blk['pw_w'], blk['pw_b'] = pw(hidden, oup)
            else:
                blk['dw1_w'], blk['dw1_b'] = dw(inp)
                (blk['pw1_w'], blk['pw1_b'],
                 blk['pw2_w'], blk['pw2_b']) = pw_pair(inp, hidden, oup)
                blk['dw2_w'], blk['dw2_b'] = dw(oup)
            blocks.append(blk)
            input_channel = output_channel
    params['blocks'] = blocks

    out_ch = (_make_divisible(1280 * width_mult, 4 if width_mult == 0.1 else 8)
              if width_mult > 1.0 else 1280)
    params['head_w'], params['head_b'] = pw(input_channel, out_ch)
    params['cls_w'] = 0.01 * jax.random.normal(next(keys), (out_ch, num_classes),
                                               dtype=jnp.float32)      # f32 classifier
    params['cls_b'] = jnp.zeros((num_classes,), jnp.float32)
    return params


# ---------------------------------------------------------------------------
# Forward pass
# ---------------------------------------------------------------------------

def mobilenetv2_forward(params, x_nchw):
    x = jnp.transpose(x_nchw, (0, 2, 3, 1)).astype(jnp.bfloat16)   # NCHW f32 -> NHWC bf16

    x = conv3x3_s2_bn_relu6(x, params['stem_w'], params['stem_b'])

    for blk in params['blocks']:
        inp_x = x
        N, H, W, C = x.shape
        if blk['t'] == 1:
            # dw 3x3 (no act) -> dw 3x3 + ReLU6 (fused, VMEM intermediate) -> 1x1 [+ identity]
            x = fused_double_depthwise(x, blk['dw1_w'], blk['dw1_b'],
                                       blk['dw2_w'], blk['dw2_b'])
            res2d = inp_x.reshape(N * H * W, C) if blk['identity'] else None
            x = pointwise_conv_bn(x.reshape(N * H * W, C), blk['pw_w'], blk['pw_b'],
                                  relu6=False, residual=res2d)
            x = x.reshape(N, H, W, -1)
        else:
            # dw 3x3 + ReLU6 -> [subsample] -> fused 1x1 expand + ReLU6 -> 1x1 project
            # -> dw 3x3 + ReLU6 [+ identity]
            x = depthwise_conv_bn(x, blk['dw1_w'], blk['dw1_b'], relu6=True)
            st = blk['stride']
            if st != 1:
                # the reference puts the stride on the 1x1 projection conv; 1x1 convs are
                # per-pixel, so subsampling before the expand conv is numerically identical
                # and cuts pointwise work / HBM traffic by st^2.
                x = x[:, ::st, ::st, :]
            N2, H2, W2, _ = x.shape
            x = fused_pw_expand_project(x.reshape(N2 * H2 * W2, C),
                                        blk['pw1_w'], blk['pw1_b'],
                                        blk['pw2_w'], blk['pw2_b'])
            x = x.reshape(N2, H2, W2, -1)
            res = inp_x if blk['identity'] else None
            x = depthwise_conv_bn(x, blk['dw2_w'], blk['dw2_b'], relu6=True, residual=res)

    N, H, W, C = x.shape
    return fused_head(x.reshape(N * H * W, C), N, H * W,
                      params['head_w'], params['head_b'],
                      params['cls_w'], params['cls_b'])


if __name__ == "__main__":
    key = jax.random.PRNGKey(0)
    pkey, xkey = jax.random.split(key)
    params = init_mobilenetv2(pkey, num_classes=1000, width_mult=1.0)
    # small input: batch=2, 3 channels, 32x32 spatial (total network stride is 32)
    x = jax.random.normal(xkey, (2, 3, 32, 32), dtype=jnp.float32)   # NCHW like PyTorch
    out = mobilenetv2_forward(params, x)
    out = jax.block_until_ready(out)
    assert out.shape == (2, 1000) and out.dtype == jnp.float32
    print("KERNEL_OK")
</pallas_src>

<mosaic_0001>
module attributes {stable_mosaic.version = 11 : i64} {
  func.func @_pw_kernel(%arg0: i32, %arg1: memref<512x27xbf16, #tpu.memory_space<vmem>>, %arg2: memref<27x32xbf16, #tpu.memory_space<vmem>>, %arg3: memref<1x32xf32, #tpu.memory_space<vmem>>, %arg4: memref<512x32xbf16, #tpu.memory_space<vmem>>) attributes {dimension_semantics = [#tpu.dimension_semantics<parallel>], iteration_bounds = array<i64: 1>, scalar_prefetch = 0 : i64, scratch_operands = 0 : i64, tpu.core_type = #tpu.core_type<tc>, window_params = [{transform_indices = @transform_0, window_bounds = array<i64: 512, 27>}, {pipeline_mode = #tpu.pipeline_mode<synchronous>, transform_indices = @transform_1, window_bounds = array<i64: 27, 32>}, {pipeline_mode = #tpu.pipeline_mode<synchronous>, transform_indices = @transform_2, window_bounds = array<i64: 1, 32>}, {transform_indices = @transform_3, window_bounds = array<i64: 512, 32>}]} {
    %c0 = arith.constant 0 : index
    %c0_0 = arith.constant 0 : index
    %0 = vector.load %arg1[%c0, %c0_0] : memref<512x27xbf16, #tpu.memory_space<vmem>>, vector<512x27xbf16>
    %c0_1 = arith.constant 0 : index
    %c0_2 = arith.constant 0 : index
    %1 = vector.load %arg2[%c0_1, %c0_2] : memref<27x32xbf16, #tpu.memory_space<vmem>>, vector<27x32xbf16>
    %cst = arith.constant dense<0.000000e+00> : vector<512x32xf32>
    %2 = tpu.matmul %0, %1, %cst {dimension_numbers = #tpu.dot_dimension_numbers<[1], [0], [0], [1], [0, 0, 1, 1], [], []>} : vector<512x27xbf16>, vector<27x32xbf16>, vector<512x32xf32> -> vector<512x32xf32>
    %c0_3 = arith.constant 0 : index
    %c0_4 = arith.constant 0 : index
    %3 = vector.load %arg3[%c0_3, %c0_4] : memref<1x32xf32, #tpu.memory_space<vmem>>, vector<1x32xf32>
    %4 = vector.broadcast %3 : vector<1x32xf32> to vector<512x32xf32>
    %5 = arith.addf %2, %4 : vector<512x32xf32>
    %cst_5 = arith.constant 0.000000e+00 : f32
    %6 = vector.broadcast %cst_5 : f32 to vector<512x32xf32>
    %7 = arith.maximumf %5, %6 : vector<512x32xf32>
    %cst_6 = arith.constant 6.000000e+00 : f32
    %8 = vector.broadcast %cst_6 : f32 to vector<512x32xf32>
    %9 = arith.minimumf %7, %8 : vector<512x32xf32>
    %10 = arith.truncf %9 : vector<512x32xf32> to vector<512x32xbf16>
    %c0_7 = arith.constant 0 : index
    %c0_8 = arith.constant 0 : index
    %11 = vector.load %arg4[%c0_7, %c0_8] : memref<512x32xbf16, #tpu.memory_space<vmem>>, vector<512x32xbf16>
    tpu.vector_store %arg4[%c0_7, %c0_8], %10 {strides = array<i32>} : memref<512x32xbf16, #tpu.memory_space<vmem>>, vector<512x32xbf16>,
    return
  }
  func.func @transform_0(%arg0: i32) -> (i32, i32) {
    %c0_i32 = arith.constant 0 : i32
    %c0_i32_0 = arith.constant 0 : i32
    return %arg0, %c0_i32 : i32, i32
  }
  func.func @transform_1(%arg0: i32) -> (i32, i32) {
    %c0_i32 = arith.constant 0 : i32
    %c0_i32_0 = arith.constant 0 : i32
    %c0_i32_1 = arith.constant 0 : i32
    return %c0_i32, %c0_i32_0 : i32, i32
  }
  func.func @transform_2(%arg0: i32) -> (i32, i32) {
    %c0_i32 = arith.constant 0 : i32
    %c0_i32_0 = arith.constant 0 : i32
    %c0_i32_1 = arith.constant 0 : i32
    return %c0_i32, %c0_i32_0 : i32, i32
  }
  func.func @transform_3(%arg0: i32) -> (i32, i32) {
    %c0_i32 = arith.constant 0 : i32
    %c0_i32_0 = arith.constant 0 : i32
    return %arg0, %c0_i32 : i32, i32
  }
}

</mosaic_0001>

<bundles_post_ra>
// kernel: tpu_custom_call.1
= control target key start
LH: loop header
LB: loop body
LE: loop exit
PB: predicated region body
PF: predicated region fallthrough
CT: control target
= control target key end

     0   :  { %vm355_vm0 = vcmask 1044480   ;;  %vm356_vm1 = vcmask 1045504   ;;  %v1002_v2 = vmov 65535   ;;  %vm258_vm2 = vcmask 220160   ;;  %s1485_s1 = inlined_call_operand.vmem [shape: bf16[27,32], index: 1, kind: input, shape index: {}]   ;;  %s1486_s2 = inlined_call_operand.vmem [shape: f32[1,32], index: 2, kind: input, shape index: {}]   ;;  %s1487_s0 = inlined_call_operand.vmem [shape: bf16[512,27], index: 0, kind: input, shape index: {}]   ;;  %s1488_s3 = inlined_call_operand.vmem [shape: bf16[512,32], index: 3, kind: output, shape index: {}]  }
   0x1   :  { %v926_v0 = vld [vmem:[%s1485_s1 + $0x8] sm:$0xf]  ;;  %v993_v1 = vld [vmem:[%s1485_s1 + $0x8] sm:$0x30]  ;;  %v357_v3 = vsel %vm355_vm0, 4294967295, %v1002_v2  ;;  %v992_v7 = vld [vmem:[%s1485_s1] sm:$0xff] }
   0x2   :  { %v927_v4 = vor.u32 %v993_v1, %v926_v0  ;;  %v358_v5 = vsel %vm356_vm1, %v357_v3, 0  ;;  %v960_v8 = vld [vmem:[%s1487_s0] sm:$0xff]  ;;  %v961_v12 = vld [vmem:[%s1487_s0 + $0x8] sm:$0xff]  ;;  %v962_v16 = vld [vmem:[%s1487_s0 + $0x10] sm:$0xff]  ;;  %vm723_vm3 = vcmask 257024  }
   0x3   :  { %v968_v9 = vld [vmem:[%s1487_s0 + $0x40] sm:$0xff]  ;;  %v969_v13 = vld [vmem:[%s1487_s0 + $0x48] sm:$0xff]  ;;  %v970_v17 = vld [vmem:[%s1487_s0 + $0x50] sm:$0xff] }
   0x4   :  { %v360_v6 = vand.u32 %v927_v4, %v358_v5  ;;  %v976_v10 = vld [vmem:[%s1487_s0 + $0x80] sm:$0xff]  ;;  %v977_v14 = vld [vmem:[%s1487_s0 + $0x88] sm:$0xff]  ;;  %v978_v18 = vld [vmem:[%s1487_s0 + $0x90] sm:$0xff] }
   0x5   :  { %v984_v11 = vld [vmem:[%s1487_s0 + $0xc0] sm:$0xff]  ;;  %v985_v15 = vld [vmem:[%s1487_s0 + $0xc8] sm:$0xff]  ;;  %v986_v19 = vld [vmem:[%s1487_s0 + $0xd0] sm:$0xff] }
   0x6   :  { %368 = vmatpush.bf16.msra.mxu0 %v360_v6  ;;  %994 = vmatpush.bf16.msra.mxu1 %v360_v6  ;;  %v963_v20 = vld [vmem:[%s1487_s0 + $0x18] sm:$0xff]  ;;  %v964_v24 = vld [vmem:[%s1487_s0 + $0x20] sm:$0xff]  ;;  %v965_v28 = vld [vmem:[%s1487_s0 + $0x28] sm:$0xff] }
   0x7   :  { %995 = vmatpush.bf16.msra.mxu2 %v360_v6  ;;  %996 = vmatpush.bf16.msra.mxu3 %v360_v6  ;;  %v971_v21 = vld [vmem:[%s1487_s0 + $0x58] sm:$0xff]  ;;  %v972_v25 = vld [vmem:[%s1487_s0 + $0x60] sm:$0xff]  ;;  %v973_v29 = vld [vmem:[%s1487_s0 + $0x68] sm:$0xff] }
   0x8   :  { %v979_v22 = vld [vmem:[%s1487_s0 + $0x98] sm:$0xff]  ;;  %v980_v26 = vld [vmem:[%s1487_s0 + $0xa0] sm:$0xff]  ;;  %v981_v30 = vld [vmem:[%s1487_s0 + $0xa8] sm:$0xff] }
   0x9   :  { %v987_v23 = vld [vmem:[%s1487_s0 + $0xd8] sm:$0xff]  ;;  %v988_v27 = vld [vmem:[%s1487_s0 + $0xe0] sm:$0xff]  ;;  %v989_v31 = vld [vmem:[%s1487_s0 + $0xe8] sm:$0xff] }
   0xa   :  { %369 = vmatpush.bf16.msra.mxu0 %v992_v7  ;;  %997 = vmatpush.bf16.msra.mxu1 %v992_v7  ;;  %v966_v32 = vld [vmem:[%s1487_s0 + $0x30] sm:$0xff]  ;;  %v967_v36 = vld [vmem:[%s1487_s0 + $0x38] sm:$0xff]  ;;  %v1163_v40 = vld [vmem:[%s1486_s2] ss:$0 sm:$0xff] }
   0xb   :  { %998 = vmatpush.bf16.msra.mxu2 %v992_v7  ;;  %999 = vmatpush.bf16.msra.mxu3 %v992_v7  ;;  %v974_v33 = vld [vmem:[%s1487_s0 + $0x70] sm:$0xff]  ;;  %v975_v37 = vld [vmem:[%s1487_s0 + $0x78] sm:$0xff] }
   0xc   :  { %v982_v34 = vld [vmem:[%s1487_s0 + $0xb0] sm:$0xff]  ;;  %v983_v38 = vld [vmem:[%s1487_s0 + $0xb8] sm:$0xff] }
   0xd   :  { %928 = vmatmul.msk.bf16.vlgmr.msra.gmra.mxu0 %vm258_vm2, %v960_v8  ;;  %936 = vmatmul.msk.bf16.vlgmr.msra.gmra.mxu1 %vm258_vm2, %v968_v9  ;;  %v990_v35 = vld [vmem:[%s1487_s0 + $0xf0] sm:$0xff]  ;;  %v991_v39 = vld [vmem:[%s1487_s0 + $0xf8] sm:$0xff] }
   0xe   :  { %944 = vmatmul.msk.bf16.vlgmr.msra.gmra.mxu2 %vm258_vm2, %v976_v10  ;;  %952 = vmatmul.msk.bf16.vlgmr.msra.gmra.mxu3 %vm258_vm2, %v984_v11 }
  0x1d   :  { %929 = vmatmul.msk.bf16.gmra.mxu0 %vm258_vm2, %v961_v12  ;;  %937 = vmatmul.msk.bf16.gmra.mxu1 %vm258_vm2, %v969_v13 }
  0x1e   :  { %945 = vmatmul.msk.bf16.gmra.mxu2 %vm258_vm2, %v977_v14  ;;  %953 = vmatmul.msk.bf16.gmra.mxu3 %vm258_vm2, %v985_v15 }
  0x2d   :  { %930 = vmatmul.msk.bf16.gmra.mxu0 %vm258_vm2, %v962_v16  ;;  %938 = vmatmul.msk.bf16.gmra.mxu1 %vm258_vm2, %v970_v17 }
  0x2e   :  { %946 = vmatmul.msk.bf16.gmra.mxu2 %vm258_vm2, %v978_v18  ;;  %954 = vmatmul.msk.bf16.gmra.mxu3 %vm258_vm2, %v986_v19 }
  0x3d   :  { %931 = vmatmul.msk.bf16.gmra.mxu0 %vm258_vm2, %v963_v20  ;;  %939 = vmatmul.msk.bf16.gmra.mxu1 %vm258_vm2, %v971_v21 }
  0x3e   :  { %947 = vmatmul.msk.bf16.gmra.mxu2 %vm258_vm2, %v979_v22  ;;  %955 = vmatmul.msk.bf16.gmra.mxu3 %vm258_vm2, %v987_v23 }
  0x4d   :  { %932 = vmatmul.msk.bf16.gmra.mxu0 %vm258_vm2, %v964_v24  ;;  %940 = vmatmul.msk.bf16.gmra.mxu1 %vm258_vm2, %v972_v25 }
  0x4e   :  { %948 = vmatmul.msk.bf16.gmra.mxu2 %vm258_vm2, %v980_v26  ;;  %956 = vmatmul.msk.bf16.gmra.mxu3 %vm258_vm2, %v988_v27 }
  0x5d   :  { %933 = vmatmul.msk.bf16.gmra.mxu0 %vm258_vm2, %v965_v28  ;;  %941 = vmatmul.msk.bf16.gmra.mxu1 %vm258_vm2, %v973_v29 }
  0x5e   :  { %949 = vmatmul.msk.bf16.gmra.mxu2 %vm258_vm2, %v981_v30  ;;  %957 = vmatmul.msk.bf16.gmra.mxu3 %vm258_vm2, %v989_v31 }
  0x6d   :  { %934 = vmatmul.msk.bf16.gmra.mxu0 %vm258_vm2, %v966_v32  ;;  %942 = vmatmul.msk.bf16.gmra.mxu1 %vm258_vm2, %v974_v33 }
  0x6e   :  { %950 = vmatmul.msk.bf16.gmra.mxu2 %vm258_vm2, %v982_v34  ;;  %958 = vmatmul.msk.bf16.gmra.mxu3 %vm258_vm2, %v990_v35 }
  0x7d   :  { %935 = vmatmul.msk.bf16.gmra.mxu0 %vm258_vm2, %v967_v36  ;;  %943 = vmatmul.msk.bf16.gmra.mxu1 %vm258_vm2, %v975_v37 }
  0x7e   :  { %951 = vmatmul.msk.bf16.gmra.mxu2 %vm258_vm2, %v983_v38  ;;  %959 = vmatmul.msk.bf16.gmra.mxu3 %vm258_vm2, %v991_v39 }
  0x8a   :  { %v371_v41 = vpop.f32.mrf.mxu0  ;;  %v411_v42 = vpop.f32.mrf.mxu1 }
  0x8b   :  { %v372_v43 = vadd.f32 %v1163_v40, %v371_v41  ;;  %v412_v44 = vadd.f32 %v1163_v40, %v411_v42 }
  0x8d   :  { %v531_v45 = vmax.f32 %v372_v43, 0.0  ;;  %v547_v46 = vmax.f32 %v412_v44, 0.0 }
  0x8f   :  { %v595_v47 = vmin.f32 %v531_v45, 6.0  ;;  %v611_v48 = vmin.f32 %v547_v46, 6.0 }
  0x91   :  { %v659_v49 = vpack.c.bf16 %v595_v47, %v595_v47  ;;  %v675_v50 = vpack.c.bf16 %v611_v48, %v611_v48  ;;  %v451_v51 = vpop.f32.mrf.mxu2  ;;  %v491_v52 = vpop.f32.mrf.mxu3 }
  0x92   :  { %v452_v53 = vadd.f32 %v1163_v40, %v451_v51  ;;  %v492_v54 = vadd.f32 %v1163_v40, %v491_v52  ;;  %v373_v55 = vpop.f32.mrf.mxu0  ;;  %v413_v56 = vpop.f32.mrf.mxu1 }
  0x93   :  { %724 = vst.msk [vmem:[%s1488_s3] sm:$0xf] %vm723_vm3, %v659_v49  ;;  %v374_v57 = vadd.f32 %v1163_v40, %v373_v55  ;;  %v414_v58 = vadd.f32 %v1163_v40, %v413_v56 }
  0x94   :  { %740 = vst.msk [vmem:[%s1488_s3 + $0x40] sm:$0xf] %vm723_vm3, %v675_v50  ;;  %v563_v59 = vmax.f32 %v452_v53, 0.0  ;;  %v579_v60 = vmax.f32 %v492_v54, 0.0 }
  0x95   :  { %v532_v61 = vmax.f32 %v374_v57, 0.0  ;;  %v548_v62 = vmax.f32 %v414_v58, 0.0 }
  0x96   :  { %v627_v63 = vmin.f32 %v563_v59, 6.0  ;;  %v643_v0 = vmin.f32 %v579_v60, 6.0 }
  0x97   :  { %v596_v1 = vmin.f32 %v532_v61, 6.0  ;;  %v612_v2 = vmin.f32 %v548_v62, 6.0 }
  0x98   :  { %v691_v3 = vpack.c.bf16 %v627_v63, %v627_v63  ;;  %v707_v4 = vpack.c.bf16 %v643_v0, %v643_v0 }
  0x99   :  { %v660_v5 = vpack.c.bf16 %v596_v1, %v596_v1  ;;  %v676_v6 = vpack.c.bf16 %v612_v2, %v612_v2  ;;  %v453_v7 = vpop.f32.mrf.mxu2  ;;  %v493_v8 = vpop.f32.mrf.mxu3 }
  0x9a   :  { %756 = vst.msk [vmem:[%s1488_s3 + $0x80] sm:$0xf] %vm723_vm3, %v691_v3  ;;  %v454_v9 = vadd.f32 %v1163_v40, %v453_v7  ;;  %v494_v10 = vadd.f32 %v1163_v40, %v493_v8  ;;  %v376_v11 = vpop.f32.mrf.mxu0  ;;  %v416_v12 = vpop.f32.mrf.mxu1 }
  0x9b   :  { %772 = vst.msk [vmem:[%s1488_s3 + $0xc0] sm:$0xf] %vm723_vm3, %v707_v4  ;;  %v377_v13 = vadd.f32 %v1163_v40, %v376_v11  ;;  %v417_v14 = vadd.f32 %v1163_v40, %v416_v12 }
  0x9c   :  { %725 = vst.msk [vmem:[%s1488_s3 + $0x4] sm:$0xf] %vm723_vm3, %v660_v5  ;;  %v564_v15 = vmax.f32 %v454_v9, 0.0  ;;  %v580_v16 = vmax.f32 %v494_v10, 0.0 }
  0x9d   :  { %741 = vst.msk [vmem:[%s1488_s3 + $0x44] sm:$0xf] %vm723_vm3, %v676_v6  ;;  %v533_v17 = vmax.f32 %v377_v13, 0.0  ;;  %v549_v18 = vmax.f32 %v417_v14, 0.0 }
  0x9e   :  { %v628_v19 = vmin.f32 %v564_v15, 6.0  ;;  %v644_v20 = vmin.f32 %v580_v16, 6.0 }
  0x9f   :  { %v597_v21 = vmin.f32 %v533_v17, 6.0  ;;  %v613_v22 = vmin.f32 %v549_v18, 6.0 }
  0xa0   :  { %v692_v23 = vpack.c.bf16 %v628_v19, %v628_v19  ;;  %v708_v24 = vpack.c.bf16 %v644_v20, %v644_v20 }
  0xa1   :  { %v661_v25 = vpack.c.bf16 %v597_v21, %v597_v21  ;;  %v677_v26 = vpack.c.bf16 %v613_v22, %v613_v22  ;;  %v456_v27 = vpop.f32.mrf.mxu2  ;;  %v496_v28 = vpop.f32.mrf.mxu3 }
  0xa2   :  { %757 = vst.msk [vmem:[%s1488_s3 + $0x84] sm:$0xf] %vm723_vm3, %v692_v23  ;;  %v457_v29 = vadd.f32 %v1163_v40, %v456_v27  ;;  %v497_v30 = vadd.f32 %v1163_v40, %v496_v28  ;;  %v378_v31 = vpop.f32.mrf.mxu0  ;;  %v418_v32 = vpop.f32.mrf.mxu1 }
  0xa3   :  { %773 = vst.msk [vmem:[%s1488_s3 + $0xc4] sm:$0xf] %vm723_vm3, %v708_v24  ;;  %v379_v33 = vadd.f32 %v1163_v40, %v378_v31  ;;  %v419_v34 = vadd.f32 %v1163_v40, %v418_v32 }
  0xa4   :  { %726 = vst.msk [vmem:[%s1488_s3 + $0x8] sm:$0xf] %vm723_vm3, %v661_v25  ;;  %v565_v35 = vmax.f32 %v457_v29, 0.0  ;;  %v581_v36 = vmax.f32 %v497_v30, 0.0 }
  0xa5   :  { %742 = vst.msk [vmem:[%s1488_s3 + $0x48] sm:$0xf] %vm723_vm3, %v677_v26  ;;  %v534_v37 = vmax.f32 %v379_v33, 0.0  ;;  %v550_v38 = vmax.f32 %v419_v34, 0.0 }
  0xa6   :  { %v629_v39 = vmin.f32 %v565_v35, 6.0  ;;  %v645_v41 = vmin.f32 %v581_v36, 6.0 }
  0xa7   :  { %v598_v42 = vmin.f32 %v534_v37, 6.0  ;;  %v614_v43 = vmin.f32 %v550_v38, 6.0 }
  0xa8   :  { %v693_v44 = vpack.c.bf16 %v629_v39, %v629_v39  ;;  %v709_v45 = vpack.c.bf16 %v645_v41, %v645_v41 }
  0xa9   :  { %v662_v46 = vpack.c.bf16 %v598_v42, %v598_v42  ;;  %v678_v47 = vpack.c.bf16 %v614_v43, %v614_v43  ;;  %v458_v48 = vpop.f32.mrf.mxu2  ;;  %v498_v49 = vpop.f32.mrf.mxu3 }
  0xaa   :  { %758 = vst.msk [vmem:[%s1488_s3 + $0x88] sm:$0xf] %vm723_vm3, %v693_v44  ;;  %v459_v50 = vadd.f32 %v1163_v40, %v458_v48  ;;  %v499_v51 = vadd.f32 %v1163_v40, %v498_v49  ;;  %v381_v52 = vpop.f32.mrf.mxu0  ;;  %v421_v53 = vpop.f32.mrf.mxu1 }
  0xab   :  { %774 = vst.msk [vmem:[%s1488_s3 + $0xc8] sm:$0xf] %vm723_vm3, %v709_v45  ;;  %v382_v54 = vadd.f32 %v1163_v40, %v381_v52  ;;  %v422_v55 = vadd.f32 %v1163_v40, %v421_v53 }
  0xac   :  { %727 = vst.msk [vmem:[%s1488_s3 + $0xc] sm:$0xf] %vm723_vm3, %v662_v46  ;;  %v566_v56 = vmax.f32 %v459_v50, 0.0  ;;  %v582_v57 = vmax.f32 %v499_v51, 0.0 }
  0xad   :  { %743 = vst.msk [vmem:[%s1488_s3 + $0x4c] sm:$0xf] %vm723_vm3, %v678_v47  ;;  %v535_v58 = vmax.f32 %v382_v54, 0.0  ;;  %v551_v59 = vmax.f32 %v422_v55, 0.0 }
  0xae   :  { %v630_v60 = vmin.f32 %v566_v56, 6.0  ;;  %v646_v61 = vmin.f32 %v582_v57, 6.0 }
  0xaf   :  { %v599_v62 = vmin.f32 %v535_v58, 6.0  ;;  %v615_v63 = vmin.f32 %v551_v59, 6.0 }
  0xb0   :  { %v694_v0 = vpack.c.bf16 %v630_v60, %v630_v60  ;;  %v710_v1 = vpack.c.bf16 %v646_v61, %v646_v61 }
  0xb1   :  { %v663_v2 = vpack.c.bf16 %v599_v62, %v599_v62  ;;  %v679_v3 = vpack.c.bf16 %v615_v63, %v615_v63  ;;  %v461_v4 = vpop.f32.mrf.mxu2  ;;  %v501_v5 = vpop.f32.mrf.mxu3 }
  0xb2   :  { %759 = vst.msk [vmem:[%s1488_s3 + $0x8c] sm:$0xf] %vm723_vm3, %v694_v0  ;;  %v462_v6 = vadd.f32 %v1163_v40, %v461_v4  ;;  %v502_v7 = vadd.f32 %v1163_v40, %v501_v5  ;;  %v383_v8 = vpop.f32.mrf.mxu0  ;;  %v423_v9 = vpop.f32.mrf.mxu1 }
  0xb3   :  { %775 = vst.msk [vmem:[%s1488_s3 + $0xcc] sm:$0xf] %vm723_vm3, %v710_v1  ;;  %v384_v10 = vadd.f32 %v1163_v40, %v383_v8  ;;  %v424_v11 = vadd.f32 %v1163_v40, %v423_v9 }
  0xb4   :  { %728 = vst.msk [vmem:[%s1488_s3 + $0x10] sm:$0xf] %vm723_vm3, %v663_v2  ;;  %v567_v12 = vmax.f32 %v462_v6, 0.0  ;;  %v583_v13 = vmax.f32 %v502_v7, 0.0 }
  0xb5   :  { %744 = vst.msk [vmem:[%s1488_s3 + $0x50] sm:$0xf] %vm723_vm3, %v679_v3  ;;  %v536_v14 = vmax.f32 %v384_v10, 0.0  ;;  %v552_v15 = vmax.f32 %v424_v11, 0.0 }
  0xb6   :  { %v631_v16 = vmin.f32 %v567_v12, 6.0  ;;  %v647_v17 = vmin.f32 %v583_v13, 6.0 }
  0xb7   :  { %v600_v18 = vmin.f32 %v536_v14, 6.0  ;;  %v616_v19 = vmin.f32 %v552_v15, 6.0 }
  0xb8   :  { %v695_v20 = vpack.c.bf16 %v631_v16, %v631_v16  ;;  %v711_v21 = vpack.c.bf16 %v647_v17, %v647_v17 }
  0xb9   :  { %v664_v22 = vpack.c.bf16 %v600_v18, %v600_v18  ;;  %v680_v23 = vpack.c.bf16 %v616_v19, %v616_v19  ;;  %v463_v24 = vpop.f32.mrf.mxu2  ;;  %v503_v25 = vpop.f32.mrf.mxu3 }
  0xba   :  { %760 = vst.msk [vmem:[%s1488_s3 + $0x90] sm:$0xf] %vm723_vm3, %v695_v20  ;;  %v464_v26 = vadd.f32 %v1163_v40, %v463_v24  ;;  %v504_v27 = vadd.f32 %v1163_v40, %v503_v25  ;;  %v386_v28 = vpop.f32.mrf.mxu0  ;;  %v426_v29 = vpop.f32.mrf.mxu1 }
  0xbb   :  { %776 = vst.msk [vmem:[%s1488_s3 + $0xd0] sm:$0xf] %vm723_vm3, %v711_v21  ;;  %v387_v30 = vadd.f32 %v1163_v40, %v386_v28  ;;  %v427_v31 = vadd.f32 %v1163_v40, %v426_v29 }
  0xbc   :  { %729 = vst.msk [vmem:[%s1488_s3 + $0x14] sm:$0xf] %vm723_vm3, %v664_v22  ;;  %v568_v32 = vmax.f32 %v464_v26, 0.0  ;;  %v584_v33 = vmax.f32 %v504_v27, 0.0 }
  0xbd   :  { %745 = vst.msk [vmem:[%s1488_s3 + $0x54] sm:$0xf] %vm723_vm3, %v680_v23  ;;  %v537_v34 = vmax.f32 %v387_v30, 0.0  ;;  %v553_v35 = vmax.f32 %v427_v31, 0.0 }
  0xbe   :  { %v632_v36 = vmin.f32 %v568_v32, 6.0  ;;  %v648_v37 = vmin.f32 %v584_v33, 6.0 }
  0xbf   :  { %v601_v38 = vmin.f32 %v537_v34, 6.0  ;;  %v617_v39 = vmin.f32 %v553_v35, 6.0 }
  0xc0   :  { %v696_v41 = vpack.c.bf16 %v632_v36, %v632_v36  ;;  %v712_v42 = vpack.c.bf16 %v648_v37, %v648_v37 }
  0xc1   :  { %v665_v43 = vpack.c.bf16 %v601_v38, %v601_v38  ;;  %v681_v44 = vpack.c.bf16 %v617_v39, %v617_v39  ;;  %v466_v45 = vpop.f32.mrf.mxu2  ;;  %v506_v46 = vpop.f32.mrf.mxu3 }
  0xc2   :  { %761 = vst.msk [vmem:[%s1488_s3 + $0x94] sm:$0xf] %vm723_vm3, %v696_v41  ;;  %v467_v47 = vadd.f32 %v1163_v40, %v466_v45  ;;  %v507_v48 = vadd.f32 %v1163_v40, %v506_v46  ;;  %v388_v49 = vpop.f32.mrf.mxu0  ;;  %v428_v50 = vpop.f32.mrf.mxu1 }
  0xc3   :  { %777 = vst.msk [vmem:[%s1488_s3 + $0xd4] sm:$0xf] %vm723_vm3, %v712_v42  ;;  %v389_v51 = vadd.f32 %v1163_v40, %v388_v49  ;;  %v429_v52 = vadd.f32 %v1163_v40, %v428_v50 }
  0xc4   :  { %730 = vst.msk [vmem:[%s1488_s3 + $0x18] sm:$0xf] %vm723_vm3, %v665_v43  ;;  %v569_v53 = vmax.f32 %v467_v47, 0.0  ;;  %v585_v54 = vmax.f32 %v507_v48, 0.0 }
  0xc5   :  { %746 = vst.msk [vmem:[%s1488_s3 + $0x58] sm:$0xf] %vm723_vm3, %v681_v44  ;;  %v538_v55 = vmax.f32 %v389_v51, 0.0  ;;  %v554_v56 = vmax.f32 %v429_v52, 0.0 }
  0xc6   :  { %v633_v57 = vmin.f32 %v569_v53, 6.0  ;;  %v649_v58 = vmin.f32 %v585_v54, 6.0 }
  0xc7   :  { %v602_v59 = vmin.f32 %v538_v55, 6.0  ;;  %v618_v60 = vmin.f32 %v554_v56, 6.0 }
  0xc8   :  { %v697_v61 = vpack.c.bf16 %v633_v57, %v633_v57  ;;  %v713_v62 = vpack.c.bf16 %v649_v58, %v649_v58 }
  0xc9   :  { %v666_v63 = vpack.c.bf16 %v602_v59, %v602_v59  ;;  %v682_v0 = vpack.c.bf16 %v618_v60, %v618_v60  ;;  %v468_v1 = vpop.f32.mrf.mxu2  ;;  %v508_v2 = vpop.f32.mrf.mxu3 }
  0xca   :  { %762 = vst.msk [vmem:[%s1488_s3 + $0x98] sm:$0xf] %vm723_vm3, %v697_v61  ;;  %v469_v3 = vadd.f32 %v1163_v40, %v468_v1  ;;  %v509_v4 = vadd.f32 %v1163_v40, %v508_v2  ;;  %v391_v5 = vpop.f32.mrf.mxu0  ;;  %v431_v6 = vpop.f32.mrf.mxu1 }
  0xcb   :  { %778 = vst.msk [vmem:[%s1488_s3 + $0xd8] sm:$0xf] %vm723_vm3, %v713_v62  ;;  %v392_v7 = vadd.f32 %v1163_v40, %v391_v5  ;;  %v432_v8 = vadd.f32 %v1163_v40, %v431_v6 }
  0xcc   :  { %731 = vst.msk [vmem:[%s1488_s3 + $0x1c] sm:$0xf] %vm723_vm3, %v666_v63  ;;  %v570_v9 = vmax.f32 %v469_v3, 0.0  ;;  %v586_v10 = vmax.f32 %v509_v4, 0.0 }
  0xcd   :  { %747 = vst.msk [vmem:[%s1488_s3 + $0x5c] sm:$0xf] %vm723_vm3, %v682_v0  ;;  %v539_v11 = vmax.f32 %v392_v7, 0.0  ;;  %v555_v12 = vmax.f32 %v432_v8, 0.0 }
  0xce   :  { %v634_v13 = vmin.f32 %v570_v9, 6.0  ;;  %v650_v14 = vmin.f32 %v586_v10, 6.0 }
  0xcf   :  { %v603_v15 = vmin.f32 %v539_v11, 6.0  ;;  %v619_v16 = vmin.f32 %v555_v12, 6.0 }
  0xd0   :  { %v698_v17 = vpack.c.bf16 %v634_v13, %v634_v13  ;;  %v714_v18 = vpack.c.bf16 %v650_v14, %v650_v14 }
  0xd1   :  { %v667_v19 = vpack.c.bf16 %v603_v15, %v603_v15  ;;  %v683_v20 = vpack.c.bf16 %v619_v16, %v619_v16  ;;  %v471_v21 = vpop.f32.mrf.mxu2  ;;  %v511_v22 = vpop.f32.mrf.mxu3 }
  0xd2   :  { %763 = vst.msk [vmem:[%s1488_s3 + $0x9c] sm:$0xf] %vm723_vm3, %v698_v17  ;;  %v472_v23 = vadd.f32 %v1163_v40, %v471_v21  ;;  %v512_v24 = vadd.f32 %v1163_v40, %v511_v22  ;;  %v393_v25 = vpop.f32.mrf.mxu0  ;;  %v433_v26 = vpop.f32.mrf.mxu1 }
  0xd3   :  { %779 = vst.msk [vmem:[%s1488_s3 + $0xdc] sm:$0xf] %vm723_vm3, %v714_v18  ;;  %v394_v27 = vadd.f32 %v1163_v40, %v393_v25  ;;  %v434_v28 = vadd.f32 %v1163_v40, %v433_v26 }
  0xd4   :  { %732 = vst.msk [vmem:[%s1488_s3 + $0x20] sm:$0xf] %vm723_vm3, %v667_v19  ;;  %v571_v29 = vmax.f32 %v472_v23, 0.0  ;;  %v587_v30 = vmax.f32 %v512_v24, 0.0 }
  0xd5   :  { %748 = vst.msk [vmem:[%s1488_s3 + $0x60] sm:$0xf] %vm723_vm3, %v683_v20  ;;  %v540_v31 = vmax.f32 %v394_v27, 0.0  ;;  %v556_v32 = vmax.f32 %v434_v28, 0.0 }
  0xd6   :  { %v635_v33 = vmin.f32 %v571_v29, 6.0  ;;  %v651_v34 = vmin.f32 %v587_v30, 6.0 }
  0xd7   :  { %v604_v35 = vmin.f32 %v540_v31, 6.0  ;;  %v620_v36 = vmin.f32 %v556_v32, 6.0 }
  0xd8   :  { %v699_v37 = vpack.c.bf16 %v635_v33, %v635_v33  ;;  %v715_v38 = vpack.c.bf16 %v651_v34, %v651_v34 }
  0xd9   :  { %v668_v39 = vpack.c.bf16 %v604_v35, %v604_v35  ;;  %v684_v41 = vpack.c.bf16 %v620_v36, %v620_v36  ;;  %v473_v42 = vpop.f32.mrf.mxu2  ;;  %v513_v43 = vpop.f32.mrf.mxu3 }
  0xda   :  { %764 = vst.msk [vmem:[%s1488_s3 + $0xa0] sm:$0xf] %vm723_vm3, %v699_v37  ;;  %v474_v44 = vadd.f32 %v1163_v40, %v473_v42  ;;  %v514_v45 = vadd.f32 %v1163_v40, %v513_v43  ;;  %v396_v46 = vpop.f32.mrf.mxu0  ;;  %v436_v47 = vpop.f32.mrf.mxu1 }
  0xdb   :  { %780 = vst.msk [vmem:[%s1488_s3 + $0xe0] sm:$0xf] %vm723_vm3, %v715_v38  ;;  %v397_v48 = vadd.f32 %v1163_v40, %v396_v46  ;;  %v437_v49 = vadd.f32 %v1163_v40, %v436_v47 }
  0xdc   :  { %733 = vst.msk [vmem:[%s1488_s3 + $0x24] sm:$0xf] %vm723_vm3, %v668_v39  ;;  %v572_v50 = vmax.f32 %v474_v44, 0.0  ;;  %v588_v51 = vmax.f32 %v514_v45, 0.0 }
  0xdd   :  { %749 = vst.msk [vmem:[%s1488_s3 + $0x64] sm:$0xf] %vm723_vm3, %v684_v41  ;;  %v541_v52 = vmax.f32 %v397_v48, 0.0  ;;  %v557_v53 = vmax.f32 %v437_v49, 0.0 }
  0xde   :  { %v636_v54 = vmin.f32 %v572_v50, 6.0  ;;  %v652_v55 = vmin.f32 %v588_v51, 6.0 }
  0xdf   :  { %v605_v56 = vmin.f32 %v541_v52, 6.0  ;;  %v621_v57 = vmin.f32 %v557_v53, 6.0 }
  0xe0   :  { %v700_v58 = vpack.c.bf16 %v636_v54, %v636_v54  ;;  %v716_v59 = vpack.c.bf16 %v652_v55, %v652_v55 }
  0xe1   :  { %v669_v60 = vpack.c.bf16 %v605_v56, %v605_v56  ;;  %v685_v61 = vpack.c.bf16 %v621_v57, %v621_v57  ;;  %v476_v62 = vpop.f32.mrf.mxu2  ;;  %v516_v63 = vpop.f32.mrf.mxu3 }
  0xe2   :  { %765 = vst.msk [vmem:[%s1488_s3 + $0xa4] sm:$0xf] %vm723_vm3, %v700_v58  ;;  %v477_v0 = vadd.f32 %v1163_v40, %v476_v62  ;;  %v517_v1 = vadd.f32 %v1163_v40, %v516_v63  ;;  %v398_v2 = vpop.f32.mrf.mxu0  ;;  %v438_v3 = vpop.f32.mrf.mxu1 }
  0xe3   :  { %781 = vst.msk [vmem:[%s1488_s3 + $0xe4] sm:$0xf] %vm723_vm3, %v716_v59  ;;  %v399_v4 = vadd.f32 %v1163_v40, %v398_v2  ;;  %v439_v5 = vadd.f32 %v1163_v40, %v438_v3 }
  0xe4   :  { %734 = vst.msk [vmem:[%s1488_s3 + $0x28] sm:$0xf] %vm723_vm3, %v669_v60  ;;  %v573_v6 = vmax.f32 %v477_v0, 0.0  ;;  %v589_v7 = vmax.f32 %v517_v1, 0.0 }
  0xe5   :  { %750 = vst.msk [vmem:[%s1488_s3 + $0x68] sm:$0xf] %vm723_vm3, %v685_v61  ;;  %v542_v8 = vmax.f32 %v399_v4, 0.0  ;;  %v558_v9 = vmax.f32 %v439_v5, 0.0 }
  0xe6   :  { %v637_v10 = vmin.f32 %v573_v6, 6.0  ;;  %v653_v11 = vmin.f32 %v589_v7, 6.0 }
  0xe7   :  { %v606_v12 = vmin.f32 %v542_v8, 6.0  ;;  %v622_v13 = vmin.f32 %v558_v9, 6.0 }
  0xe8   :  { %v701_v14 = vpack.c.bf16 %v637_v10, %v637_v10  ;;  %v717_v15 = vpack.c.bf16 %v653_v11, %v653_v11 }
  0xe9   :  { %v670_v16 = vpack.c.bf16 %v606_v12, %v606_v12  ;;  %v686_v17 = vpack.c.bf16 %v622_v13, %v622_v13  ;;  %v478_v18 = vpop.f32.mrf.mxu2  ;;  %v518_v19 = vpop.f32.mrf.mxu3 }
  0xea   :  { %766 = vst.msk [vmem:[%s1488_s3 + $0xa8] sm:$0xf] %vm723_vm3, %v701_v14  ;;  %v479_v20 = vadd.f32 %v1163_v40, %v478_v18  ;;  %v519_v21 = vadd.f32 %v1163_v40, %v518_v19  ;;  %v401_v22 = vpop.f32.mrf.mxu0  ;;  %v441_v23 = vpop.f32.mrf.mxu1 }
  0xeb   :  { %782 = vst.msk [vmem:[%s1488_s3 + $0xe8] sm:$0xf] %vm723_vm3, %v717_v15  ;;  %v402_v24 = vadd.f32 %v1163_v40, %v401_v22  ;;  %v442_v25 = vadd.f32 %v1163_v40, %v441_v23 }
  0xec   :  { %735 = vst.msk [vmem:[%s1488_s3 + $0x2c] sm:$0xf] %vm723_vm3, %v670_v16  ;;  %v574_v26 = vmax.f32 %v479_v20, 0.0  ;;  %v590_v27 = vmax.f32 %v519_v21, 0.0 }
  0xed   :  { %751 = vst.msk [vmem:[%s1488_s3 + $0x6c] sm:$0xf] %vm723_vm3, %v686_v17  ;;  %v543_v28 = vmax.f32 %v402_v24, 0.0  ;;  %v559_v29 = vmax.f32 %v442_v25, 0.0 }
  0xee   :  { %v638_v30 = vmin.f32 %v574_v26, 6.0  ;;  %v654_v31 = vmin.f32 %v590_v27, 6.0 }
  0xef   :  { %v607_v32 = vmin.f32 %v543_v28, 6.0  ;;  %v623_v33 = vmin.f32 %v559_v29, 6.0 }
  0xf0   :  { %v702_v34 = vpack.c.bf16 %v638_v30, %v638_v30  ;;  %v718_v35 = vpack.c.bf16 %v654_v31, %v654_v31 }
  0xf1   :  { %v671_v36 = vpack.c.bf16 %v607_v32, %v607_v32  ;;  %v687_v37 = vpack.c.bf16 %v623_v33, %v623_v33  ;;  %v481_v38 = vpop.f32.mrf.mxu2  ;;  %v521_v39 = vpop.f32.mrf.mxu3 }
  0xf2   :  { %767 = vst.msk [vmem:[%s1488_s3 + $0xac] sm:$0xf] %vm723_vm3, %v702_v34  ;;  %v482_v41 = vadd.f32 %v1163_v40, %v481_v38  ;;  %v522_v42 = vadd.f32 %v1163_v40, %v521_v39  ;;  %v403_v43 = vpop.f32.mrf.mxu0  ;;  %v443_v44 = vpop.f32.mrf.mxu1 }
  0xf3   :  { %783 = vst.msk [vmem:[%s1488_s3 + $0xec] sm:$0xf] %vm723_vm3, %v718_v35  ;;  %v404_v45 = vadd.f32 %v1163_v40, %v403_v43  ;;  %v444_v46 = vadd.f32 %v1163_v40, %v443_v44 }
  0xf4   :  { %736 = vst.msk [vmem:[%s1488_s3 + $0x30] sm:$0xf] %vm723_vm3, %v671_v36  ;;  %v575_v47 = vmax.f32 %v482_v41, 0.0  ;;  %v591_v48 = vmax.f32 %v522_v42, 0.0 }
  0xf5   :  { %752 = vst.msk [vmem:[%s1488_s3 + $0x70] sm:$0xf] %vm723_vm3, %v687_v37  ;;  %v544_v49 = vmax.f32 %v404_v45, 0.0  ;;  %v560_v50 = vmax.f32 %v444_v46, 0.0 }
  0xf6   :  { %v639_v51 = vmin.f32 %v575_v47, 6.0  ;;  %v655_v52 = vmin.f32 %v591_v48, 6.0 }
  0xf7   :  { %v608_v53 = vmin.f32 %v544_v49, 6.0  ;;  %v624_v54 = vmin.f32 %v560_v50, 6.0 }
  0xf8   :  { %v703_v55 = vpack.c.bf16 %v639_v51, %v639_v51  ;;  %v719_v56 = vpack.c.bf16 %v655_v52, %v655_v52 }
  0xf9   :  { %v672_v57 = vpack.c.bf16 %v608_v53, %v608_v53  ;;  %v688_v58 = vpack.c.bf16 %v624_v54, %v624_v54  ;;  %v483_v59 = vpop.f32.mrf.mxu2  ;;  %v523_v60 = vpop.f32.mrf.mxu3 }
  0xfa   :  { %768 = vst.msk [vmem:[%s1488_s3 + $0xb0] sm:$0xf] %vm723_vm3, %v703_v55  ;;  %v484_v61 = vadd.f32 %v1163_v40, %v483_v59  ;;  %v524_v62 = vadd.f32 %v1163_v40, %v523_v60  ;;  %v406_v63 = vpop.f32.mrf.mxu0  ;;  %v446_v0 = vpop.f32.mrf.mxu1 }
  0xfb   :  { %784 = vst.msk [vmem:[%s1488_s3 + $0xf0] sm:$0xf] %vm723_vm3, %v719_v56  ;;  %v407_v1 = vadd.f32 %v1163_v40, %v406_v63  ;;  %v447_v2 = vadd.f32 %v1163_v40, %v446_v0 }
  0xfc   :  { %737 = vst.msk [vmem:[%s1488_s3 + $0x34] sm:$0xf] %vm723_vm3, %v672_v57  ;;  %v576_v3 = vmax.f32 %v484_v61, 0.0  ;;  %v592_v4 = vmax.f32 %v524_v62, 0.0 }
  0xfd   :  { %753 = vst.msk [vmem:[%s1488_s3 + $0x74] sm:$0xf] %vm723_vm3, %v688_v58  ;;  %v545_v5 = vmax.f32 %v407_v1, 0.0  ;;  %v561_v6 = vmax.f32 %v447_v2, 0.0 }
  0xfe   :  { %v640_v7 = vmin.f32 %v576_v3, 6.0  ;;  %v656_v8 = vmin.f32 %v592_v4, 6.0 }
  0xff   :  { %v609_v9 = vmin.f32 %v545_v5, 6.0  ;;  %v625_v10 = vmin.f32 %v561_v6, 6.0 }
 0x100   :  { %v704_v11 = vpack.c.bf16 %v640_v7, %v640_v7  ;;  %v720_v12 = vpack.c.bf16 %v656_v8, %v656_v8 }
 0x101   :  { %v673_v13 = vpack.c.bf16 %v609_v9, %v609_v9  ;;  %v689_v14 = vpack.c.bf16 %v625_v10, %v625_v10  ;;  %v486_v15 = vpop.f32.mrf.mxu2  ;;  %v526_v16 = vpop.f32.mrf.mxu3 }
 0x102   :  { %769 = vst.msk [vmem:[%s1488_s3 + $0xb4] sm:$0xf] %vm723_vm3, %v704_v11  ;;  %v487_v17 = vadd.f32 %v1163_v40, %v486_v15  ;;  %v527_v18 = vadd.f32 %v1163_v40, %v526_v16  ;;  %v408_v19 = vpop.f32.mrf.mxu0  ;;  %v448_v20 = vpop.f32.mrf.mxu1 }
 0x103   :  { %785 = vst.msk [vmem:[%s1488_s3 + $0xf4] sm:$0xf] %vm723_vm3, %v720_v12  ;;  %v409_v21 = vadd.f32 %v1163_v40, %v408_v19  ;;  %v449_v22 = vadd.f32 %v1163_v40, %v448_v20 }
 0x104   :  { %738 = vst.msk [vmem:[%s1488_s3 + $0x38] sm:$0xf] %vm723_vm3, %v673_v13  ;;  %v577_v23 = vmax.f32 %v487_v17, 0.0  ;;  %v593_v24 = vmax.f32 %v527_v18, 0.0 }
 0x105   :  { %754 = vst.msk [vmem:[%s1488_s3 + $0x78] sm:$0xf] %vm723_vm3, %v689_v14  ;;  %v546_v25 = vmax.f32 %v409_v21, 0.0  ;;  %v562_v26 = vmax.f32 %v449_v22, 0.0 }
 0x106   :  { %v641_v27 = vmin.f32 %v577_v23, 6.0  ;;  %v657_v28 = vmin.f32 %v593_v24, 6.0 }
 0x107   :  { %v610_v29 = vmin.f32 %v546_v25, 6.0  ;;  %v626_v30 = vmin.f32 %v562_v26, 6.0 }
 0x108   :  { %v705_v31 = vpack.c.bf16 %v641_v27, %v641_v27  ;;  %v721_v32 = vpack.c.bf16 %v657_v28, %v657_v28 }
 0x109   :  { %v674_v33 = vpack.c.bf16 %v610_v29, %v610_v29  ;;  %v690_v34 = vpack.c.bf16 %v626_v30, %v626_v30  ;;  %v488_v35 = vpop.f32.mrf.mxu2  ;;  %v528_v36 = vpop.f32.mrf.mxu3 }
 0x10a   :  { %770 = vst.msk [vmem:[%s1488_s3 + $0xb8] sm:$0xf] %vm723_vm3, %v705_v31  ;;  %v489_v37 = vadd.f32 %v1163_v40, %v488_v35  ;;  %v529_v38 = vadd.f32 %v1163_v40, %v528_v36 }
 0x10b   :  { %786 = vst.msk [vmem:[%s1488_s3 + $0xf8] sm:$0xf] %vm723_vm3, %v721_v32 }
 0x10c   :  { %739 = vst.msk [vmem:[%s1488_s3 + $0x3c] sm:$0xf] %vm723_vm3, %v674_v33  ;;  %v578_v39 = vmax.f32 %v489_v37, 0.0  ;;  %v594_v41 = vmax.f32 %v529_v38, 0.0 }
 0x10d   :  { %755 = vst.msk [vmem:[%s1488_s3 + $0x7c] sm:$0xf] %vm723_vm3, %v690_v34 }
 0x10e   :  { %v642_v42 = vmin.f32 %v578_v39, 6.0  ;;  %v658_v43 = vmin.f32 %v594_v41, 6.0 }
 0x110   :  { %v706_v40 = vpack.c.bf16 %v642_v42, %v642_v42  ;;  %v722_v44 = vpack.c.bf16 %v658_v43, %v658_v43 }
 0x112   :  { %771 = vst.msk [vmem:[%s1488_s3 + $0xbc] sm:$0xf] %vm723_vm3, %v706_v40 }
 0x113   :  { %787 = vst.msk [vmem:[%s1488_s3 + $0xfc] sm:$0xf] %vm723_vm3, %v722_v44 }

</bundles_post_ra>
